<compile_context>
chip_gen: v6e
topology: v6e:2x2x1
jax: 0.10.0
libtpu: 0.0.40
codegen_flags: <defaults>
</compile_context>

<pallas_src>
import jax
import jax.numpy as jnp
from jax import lax
from jax.experimental import pallas as pl
from jax.experimental.pallas import tpu as pltpu


def _conv_mm_kernel(w_ref, x_ref, o_ref):
    # w_ref: (E, K)      bf16   flattened conv weights, k = (ky*3+kx)*C + c
    # x_ref: (1, K, TP)  bf16   im2col columns for this spatial tile
    # o_ref: (1, E, TP)  f32    lane-dense output tile (already NCHW order)
    o_ref[0] = jnp.dot(w_ref[...], x_ref[0],
                       preferred_element_type=jnp.float32)


def _choose_spatial_tile(P, max_tile=4096):
    """Largest TP <= max_tile with P % TP == 0 and TP % 128 == 0.

    TP % 128 keeps input/output blocks lane-aligned; capping TP bounds the
    double-buffered VMEM footprint and keeps the grid multi-step so the
    pipeline has DMA/compute overlap.  Falls back to the full spatial extent
    (block == full array dim is always legal).
    """
    best = None
    t = 128
    while t <= min(P, max_tile):
        if P % t == 0:
            best = t
        t += 128
    return best if best is not None else P


@jax.jit
def overlap_patch_embed(x_nchw, weight_oihw):
    """Pallas OverlapPatchEmbed.forward: Conv2d(k=3, s=1, p=1, bias=False).

    Args:
      x_nchw:      (N, C, H, W) float32
      weight_oihw: (E, C, 3, 3) float32 (torch Conv2d weight layout)
    Returns:
      (N, E, H, W) float32
    """
    N, C, H, W = x_nchw.shape
    E = weight_oihw.shape[0]
    K = 9 * C
    P = H * W

    # ---- wrapper glue (fused by XLA under jit) ------------------------------
    # im2col straight in NCHW: tap ordering (dy, dx, c) along the K axis.
    x_pad = jnp.pad(x_nchw, ((0, 0), (0, 0), (1, 1), (1, 1)))   # (N,C,H+2,W+2)
    taps = [x_pad[:, :, dy:dy + H, dx:dx + W]
            for dy in range(3) for dx in range(3)]
    patches = jnp.concatenate(taps, axis=1).reshape(N, K, P)    # (N,9C,H*W)
    patches = patches.astype(jnp.bfloat16)
    # Weights: (E, C, 3, 3) -> (E, ky, kx, C) -> (E, 9C); cross-correlation
    # orientation matches torch.nn.Conv2d, k ordering matches the taps above.
    w = jnp.transpose(weight_oihw, (0, 2, 3, 1)).reshape(E, K).astype(jnp.bfloat16)

    TP = _choose_spatial_tile(P)
    grid = (N, P // TP)

    cost = pl.CostEstimate(
        flops=2 * N * P * K * E,
        transcendentals=0,
        bytes_accessed=(patches.size * patches.dtype.itemsize
                        + w.size * w.dtype.itemsize
                        + N * E * P * 4),
    )

    out_flat = pl.pallas_call(
        _conv_mm_kernel,
        out_shape=jax.ShapeDtypeStruct((N, E, P), jnp.float32),
        grid_spec=pltpu.PrefetchScalarGridSpec(
            num_scalar_prefetch=0,
            grid=grid,
            in_specs=[
                pl.BlockSpec((E, K), lambda n, p: (0, 0)),
                pl.BlockSpec((1, K, TP), lambda n, p: (n, 0, p)),
            ],
            out_specs=pl.BlockSpec((1, E, TP), lambda n, p: (n, 0, p)),
        ),
        compiler_params=pltpu.CompilerParams(
            dimension_semantics=("parallel", "parallel"),
        ),
        cost_estimate=cost,
    )(w, patches)

    # Already NCHW ordered: (N, E, H*W) -> (N, E, H, W).
    return out_flat.reshape(N, E, H, W)


if __name__ == "__main__":
    # Small shapes consistent with the module: in_c=4, embed_dim=32.
    N, C, H, W = 2, 4, 16, 16
    E = 32

    key = jax.random.PRNGKey(0)
    kx, kw = jax.random.split(key)
    x = jax.random.normal(kx, (N, C, H, W), dtype=jnp.float32)
    # torch Conv2d weight layout (out_c, in_c, kH, kW), bias=False.
    weight = jax.random.normal(kw, (E, C, 3, 3), dtype=jnp.float32) * 0.05

    out = jax.block_until_ready(overlap_patch_embed(x, weight))
    assert out.shape == (N, E, H, W)

    # Reference: same conv on bf16-rounded operands (kernel feeds the MXU bf16
    # with f32 accumulation), so the comparison stays tight.
    xb = x.astype(jnp.bfloat16).astype(jnp.float32)
    wb = weight.astype(jnp.bfloat16).astype(jnp.float32)
    ref = lax.conv_general_dilated(
        xb, wb,
        window_strides=(1, 1),
        padding=((1, 1), (1, 1)),
        dimension_numbers=("NCHW", "OIHW", "NCHW"),
    )
    assert jnp.allclose(out, ref, atol=1e-2, rtol=1e-2), "mismatch vs reference conv"

    print("KERNEL_OK")
</pallas_src>

<mosaic_0001>
module attributes {stable_mosaic.version = 11 : i64} {
  func.func @_conv_mm_kernel(%arg0: i32, %arg1: i32, %arg2: memref<32x36xbf16, #tpu.memory_space<vmem>>, %arg3: memref<1x36x256xbf16, #tpu.memory_space<vmem>>, %arg4: memref<1x32x256xf32, #tpu.memory_space<vmem>>) attributes {dimension_semantics = [#tpu.dimension_semantics<parallel>, #tpu.dimension_semantics<parallel>], iteration_bounds = array<i64: 2, 1>, scalar_prefetch = 0 : i64, scratch_operands = 0 : i64, tpu.core_type = #tpu.core_type<tc>, window_params = [{pipeline_mode = #tpu.pipeline_mode<synchronous>, transform_indices = @transform_0, window_bounds = array<i64: 32, 36>}, {transform_indices = @transform_1, window_bounds = array<i64: 1, 36, 256>}, {transform_indices = @transform_2, window_bounds = array<i64: 1, 32, 256>}]} {
    %c0 = arith.constant 0 : index
    %c0_0 = arith.constant 0 : index
    %0 = vector.load %arg2[%c0, %c0_0] : memref<32x36xbf16, #tpu.memory_space<vmem>>, vector<32x36xbf16>
    %c0_1 = arith.constant 0 : index
    %c0_2 = arith.constant 0 : index
    %c0_3 = arith.constant 0 : index
    %1 = vector.load %arg3[%c0_1, %c0_2, %c0_3] : memref<1x36x256xbf16, #tpu.memory_space<vmem>>, vector<1x36x256xbf16>
    %2 = vector.shape_cast %1 : vector<1x36x256xbf16> to vector<36x256xbf16>
    %cst = arith.constant dense<0.000000e+00> : vector<32x256xf32>
    %3 = tpu.matmul %0, %2, %cst {dimension_numbers = #tpu.dot_dimension_numbers<[1], [0], [0], [1], [0, 0, 1, 1], [], []>} : vector<32x36xbf16>, vector<36x256xbf16>, vector<32x256xf32> -> vector<32x256xf32>
    %c0_4 = arith.constant 0 : index
    %c0_5 = arith.constant 0 : index
    %c0_6 = arith.constant 0 : index
    %4 = vector.load %arg4[%c0_4, %c0_5, %c0_6] : memref<1x32x256xf32, #tpu.memory_space<vmem>>, vector<1x32x256xf32>
    %5 = vector.shape_cast %4 : vector<1x32x256xf32> to vector<32x256xf32>
    %6 = vector.shape_cast %3 : vector<32x256xf32> to vector<1x32x256xf32>
    tpu.vector_store %arg4[%c0_4, %c0_5, %c0_6], %6 {strides = array<i32>} : memref<1x32x256xf32, #tpu.memory_space<vmem>>, vector<1x32x256xf32>,
    return
  }
  func.func @transform_0(%arg0: i32, %arg1: i32) -> (i32, i32) {
    %c0_i32 = arith.constant 0 : i32
    %c0_i32_0 = arith.constant 0 : i32
    %c0_i32_1 = arith.constant 0 : i32
    return %c0_i32, %c0_i32_0 : i32, i32
  }
  func.func @transform_1(%arg0: i32, %arg1: i32) -> (i32, i32, i32) {
    %c0_i32 = arith.constant 0 : i32
    %c0_i32_0 = arith.constant 0 : i32
    return %arg0, %c0_i32, %arg1 : i32, i32, i32
  }
  func.func @transform_2(%arg0: i32, %arg1: i32) -> (i32, i32, i32) {
    %c0_i32 = arith.constant 0 : i32
    %c0_i32_0 = arith.constant 0 : i32
    return %arg0, %c0_i32, %arg1 : i32, i32, i32
  }
}

</mosaic_0001>

<bundles_post_ra>
// kernel: overlap_patch_embed.1
= control target key start
LH: loop header
LB: loop body
LE: loop exit
PB: predicated region body
PF: predicated region fallthrough
CT: control target
= control target key end

     0   :  { %s494_s9 = smov 0   ;;  %s496_s10 = smov 0   ;;  %s537_s0 = inlined_call_operand.vmem [shape: bf16[32,36], index: 0, kind: input, shape index: {}]   ;;  %s538_s1 = inlined_call_operand.vmem [shape: bf16[2,36,256], index: 1, kind: input, shape index: {}]   ;;  %s539_s2 = inlined_call_operand.vmem [shape: f32[2,32,256], index: 2, kind: output, shape index: {}]  }
   0x1   :  { %s498_s11 = smov 0  }
   0x2 LB: > { %s24_s12 = sadd.s32 1, %s472_s10  ;;  %p394_p0 = scmp.ge.s32.totalorder %s476_s11, 1  ;;  %s476_s11 = sphi %s498_s11, %s12_s11   ;;  %s472_s10 = sphi %s496_s10, %s541_s10   ;;  %s468_s9 = sphi %s494_s9, %s540_s9  }
   0x3   : > { %p26_p1 = scmp.ge.s32.totalorder %s24_s12, 2  ;;  %p133_p2 = scmp.lt.s32.totalorder %s476_s11, 3 }
   0x5   : > { %s543_s12 = smov (%p26_p1, %s24_s12), 0  ;;  %p134_p3 = pnand %p394_p0, %p133_p2 }
   0x6   : > { %p164_p4 = scmp.lt.s32.totalorder (!%p134_p3), %s468_s9, 1 }
   0x7   : > { %137 = sbr.rel (%p134_p3) target bundleno = 231 (0xe7), region = 28 }
   0xc   : > { %v478_v0 = vmov 0   ;;  %s545_s9 = smov (!%p164_p4, %s468_s9), 1  ;;  %vm235_vm0 = vcmask 1041408   ;;  %v452_v9 = vld [vmem:[%s537_s0] sm:$0xff]   ;;  %v453_v10 = vld [vmem:[%s537_s0 + $0x8] sm:$0xff]   ;;  %vm228_vm1 = vcmask 293888  }
   0xd   : > { %274 = vmatprep.mubr.bf16.mxu0 %v478_v0  ;;  %284 = vmatprep.mubr.bf16.mxu1 %v478_v0  ;;  %s418_s13 = smul.u32 40, %s545_s9  ;;  %s411_s21 = sshll.u32 %s545_s9, 6 }
   0xe   : > { %s181_s24 = scalar_lea.vmem %s539_s2, %s411_s21 }
   0xf   : > { %s171_s16 = scalar_lea.vmem %s538_s1, %s418_s13 }
  0x10   : > { %v192_v1 = vld [vmem:[%s171_s16 + $0x20] sm:$0x33]  ;;  %v446_v4 = vld [vmem:[%s171_s16 + $0x14] ss:$8 sps:$4 sm:$0xff]   ;;  %v448_v6 = vld [vmem:[%s171_s16 + $0x10] ss:$8 sps:$4 sm:$0xff]  }
  0x11   : > { %v405_v2 = vcombine.high %v192_v1, %v192_v1  ;;  %v404_v3 = vcombine.low %v192_v1, %v192_v1  ;;  %v449_v7 = vld [vmem:[%s171_s16 + $0x4] ss:$8 sps:$4 sm:$0xff]   ;;  %v451_v8 = vld [vmem:[%s171_s16] ss:$8 sps:$4 sm:$0xff]  }
  0x13   : > { %406 = vmatprep.subr.msk.bf16.mxu0 %vm235_vm0, %v405_v2  ;;  %412 = vmatprep.subr.msk.bf16.mxu1 %vm235_vm0, %v405_v2  ;;  %v237_v5 = vsel %vm235_vm0, %v404_v3, 0 }
  0x14   : > { %253 = vmatpush1.bf16.msra.mxu0 %v237_v5  ;;  %415 = vmatpush1.bf16.msra.mxu1 %v237_v5 }
  0x15   : > { %254 = vmatprep.subr.bf16.mxu0 %v446_v4  ;;  %413 = vmatprep.subr.bf16.mxu1 %v446_v4 }
  0x18   : > { %255 = vmatpush1.bf16.msra.mxu0 %v448_v6  ;;  %416 = vmatpush1.bf16.msra.mxu1 %v448_v6 }
  0x19   : > { %256 = vmatprep.subr.bf16.mxu0 %v449_v7  ;;  %414 = vmatprep.subr.bf16.mxu1 %v449_v7 }
  0x1c   : > { %257 = vmatpush1.bf16.msra.mxu0 %v451_v8  ;;  %417 = vmatpush1.bf16.msra.mxu1 %v451_v8 }
  0x1f   : > { %407 = vmatmul.mubr.msk.bf16.vlgmr.msra.gmra.mxu0 %vm228_vm1, %v452_v9  ;;  %408 = vmatmul.mubr.msk.bf16.vlgmr.msra.gmra.mxu1 %vm228_vm1, %v453_v10 }
  0xdf   : > { %v276_v11 = vpop.f32.mrf.mxu0  ;;  %v286_v12 = vpop.f32.mrf.mxu1 }
  0xe0   : > { %295 = vst [vmem:[%s181_s24] sm:$0xff] %v276_v11  ;;  %299 = vst [vmem:[%s181_s24 + $0x20] sm:$0xff] %v286_v12 }
  0xe1   : > { %v278_v13 = vpop.f32.mrf.mxu0  ;;  %v288_v14 = vpop.f32.mrf.mxu1 }
  0xe2   : > { %296 = vst [vmem:[%s181_s24 + $0x8] sm:$0xff] %v278_v13  ;;  %300 = vst [vmem:[%s181_s24 + $0x28] sm:$0xff] %v288_v14 }
  0xe3   : > { %v280_v15 = vpop.f32.mrf.mxu0  ;;  %v290_v16 = vpop.f32.mrf.mxu1 }
  0xe4   : > { %297 = vst [vmem:[%s181_s24 + $0x10] sm:$0xff] %v280_v15  ;;  %301 = vst [vmem:[%s181_s24 + $0x30] sm:$0xff] %v290_v16 }
  0xe5   : > { %v282_v17 = vpop.f32.mrf.mxu0  ;;  %v292_v18 = vpop.f32.mrf.mxu1 }
  0xe6   : > { %298 = vst [vmem:[%s181_s24 + $0x18] sm:$0xff] %v282_v17  ;;  %302 = vst [vmem:[%s181_s24 + $0x38] sm:$0xff] %v292_v18 }
  0xe7 PF: > { %s12_s11 = sadd.s32 1, %s476_s11   ;;  %s540_s9 = smov %s472_s10 }
  0xe8   : > { %p9_p5 = scmp.ge.s32.totalorder %s12_s11, 4   ;;  %s541_s10 = smov %s543_s12 }
  0xea   :  { %11 = sbr.rel (!%p9_p5) target bundleno = 2 (0x2), region = 58 }

</bundles_post_ra>
